<compile_context>
chip_gen: v5e
topology: v5e:2x2
jax: 0.10.0
libtpu: 0.0.40
codegen_flags: <defaults>
</compile_context>

<pallas_src>
import jax
import jax.numpy as jnp
from jax.experimental import pallas as pl
from jax.experimental.pallas import tpu as pltpu

# ---- model dimensions (small, consistent with the module's __init__) ----
BATCH = 8
GNN_OUT = 32          # gnn_out_channels
FCN_OUT = 32          # fcn_out_channels
SCH_OUT = 128         # sch_out_channels (SchNet out_channels=128)
MID_HIDDEN = 64       # mid_hidden_size
NUM_CLASSES = 2       # num_classes
OUT_PAD = 128         # lane-dense padded output width

CAT_DIM = GNN_OUT + FCN_OUT + SCH_OUT   # 192 = concat([gnn, fcn, sch]) width


def sphere_head_kernel(
    x_ref,                  # (TB, 192) bf16  concat([gnn_out, fcn_out, sch_out])
    w1_ref, b1_ref,         # folded hid_lin: (192, 64) bf16, (1, 64) f32
    w2_ref, b2_ref,         # padded out_lin: (64, 128) bf16, (1, 128) f32
    out_ref,                # (TB, 128) f32, lane-dense
):
    f32 = jnp.float32
    bf16 = jnp.bfloat16

    # folded (gcn_lin1 | fcn_lin1 | identity) -> hid_lin in one MXU push
    hid = jnp.dot(x_ref[...], w1_ref[...], preferred_element_type=f32) + b1_ref[...]
    hid = jnp.maximum(hid, 0.0)          # ReLU (f32 on VPU)

    # out_lin, padded to 128 lanes -> unmasked vst
    out_ref[...] = (
        jnp.dot(hid.astype(bf16), w2_ref[...], preferred_element_type=f32)
        + b2_ref[...]
    ).astype(out_ref.dtype)


def prepare_kernel_params(p):
    """Host-side weight prep: fold gcn_lin1 / fcn_lin1 into hid_lin (no
    nonlinearity in between), pad out_lin to 128 lanes, cast matmul operands
    to bf16 (biases stay f32)."""
    bf16 = jnp.bfloat16

    wh_g = p["wh"][:GNN_OUT]                          # (32, 64)
    wh_f = p["wh"][GNN_OUT:GNN_OUT + FCN_OUT]         # (32, 64)
    wh_s = p["wh"][GNN_OUT + FCN_OUT:]                # (128, 64)

    w1 = jnp.concatenate(
        [p["wg"] @ wh_g, p["wf"] @ wh_f, wh_s], axis=0)          # (192, 64) f32
    b1 = p["bg"] @ wh_g + p["bf"] @ wh_f + p["bh"]               # (1, 64)  f32

    w2 = jnp.zeros((MID_HIDDEN, OUT_PAD), jnp.float32)
    w2 = w2.at[:, :NUM_CLASSES].set(p["wo"])
    b2 = jnp.zeros((1, OUT_PAD), jnp.float32)
    b2 = b2.at[:, :NUM_CLASSES].set(p["bo"])

    return dict(w1=w1.astype(bf16), b1=b1, w2=w2.astype(bf16), b2=b2)


def sphere_net_head(gnn_out, fcn_out, sch_out, params):
    """Run the Sphere_Net fusion head as a batch-tiled Pallas kernel."""
    B = gnn_out.shape[0]
    TB = B if B <= 256 else 256
    assert B % TB == 0, "batch must be divisible by the batch tile"
    grid = (B // TB,)

    kp = prepare_kernel_params(params)
    x = jnp.concatenate([gnn_out, fcn_out, sch_out], axis=1).astype(jnp.bfloat16)

    def pinned_spec(arr):
        return pl.BlockSpec(arr.shape, lambda i: (0, 0))

    out_pad = pl.pallas_call(
        sphere_head_kernel,
        out_shape=jax.ShapeDtypeStruct((B, OUT_PAD), jnp.float32),
        grid=grid,
        in_specs=[
            pl.BlockSpec((TB, CAT_DIM), lambda i: (i, 0)),   # activations
            pinned_spec(kp["w1"]), pinned_spec(kp["b1"]),
            pinned_spec(kp["w2"]), pinned_spec(kp["b2"]),
        ],
        out_specs=pl.BlockSpec((TB, OUT_PAD), lambda i: (i, 0)),
        compiler_params=pltpu.CompilerParams(
            dimension_semantics=("parallel",),
            vmem_limit_bytes=32 << 20,
        ),
    )(x, kp["w1"], kp["b1"], kp["w2"], kp["b2"])

    return out_pad[:, :NUM_CLASSES]


def init_params(key):
    """Deterministic parameter init.  Linear y = x @ W + b (W stored [in, out],
    equivalent to PyTorch's x @ weight.T + bias)."""
    ks = jax.random.split(key, 4)

    def lin(k, din, dout):
        scale = 1.0 / jnp.sqrt(jnp.float32(din))
        kw, kb = jax.random.split(k)
        w = jax.random.uniform(kw, (din, dout), jnp.float32, -scale, scale)
        b = jax.random.uniform(kb, (1, dout), jnp.float32, -scale, scale)
        return w, b

    wg, bg = lin(ks[0], GNN_OUT, GNN_OUT)            # gcn_lin1
    wf, bf = lin(ks[1], FCN_OUT, FCN_OUT)            # fcn_lin1
    wh, bh = lin(ks[2], CAT_DIM, MID_HIDDEN)         # hid_lin
    wo, bo = lin(ks[3], MID_HIDDEN, NUM_CLASSES)     # out_lin
    return dict(wg=wg, bg=bg, wf=wf, bf=bf, wh=wh, bh=bh, wo=wo, bo=bo)


def reference_head_f32(gnn_out, fcn_out, sch_out, p):
    """Plain-JAX f32 reference of the PyTorch forward (head part)."""
    gnn = gnn_out @ p["wg"] + p["bg"]
    fcn = fcn_out @ p["wf"] + p["bf"]
    cat = jnp.concatenate([gnn, fcn, sch_out], axis=1)
    hid = jnp.maximum(cat @ p["wh"] + p["bh"], 0.0)
    return hid @ p["wo"] + p["bo"]


def reference_head_bf16(gnn_out, fcn_out, sch_out, params):
    """Reference mimicking the kernel's folded bf16-dot / f32-accumulate math."""
    f32, bf16 = jnp.float32, jnp.bfloat16
    kp = prepare_kernel_params(params)
    x = jnp.concatenate([gnn_out, fcn_out, sch_out], axis=1).astype(bf16)
    hid = jnp.dot(x, kp["w1"], preferred_element_type=f32) + kp["b1"]
    hid = jnp.maximum(hid, 0.0)
    out = jnp.dot(hid.astype(bf16), kp["w2"], preferred_element_type=f32) + kp["b2"]
    return out[:, :NUM_CLASSES]


if __name__ == "__main__":
    key = jax.random.PRNGKey(0)
    k_in, k_par = jax.random.split(key)
    k1, k2, k3 = jax.random.split(k_in, 3)

    # backbone outputs (stand-ins for GIN / FPN / SchNet features)
    gnn_out = jax.random.normal(k1, (BATCH, GNN_OUT), jnp.float32)
    fcn_out = jax.random.normal(k2, (BATCH, FCN_OUT), jnp.float32)
    sch_out = jax.random.normal(k3, (BATCH, SCH_OUT), jnp.float32)

    params = init_params(k_par)

    out = sphere_net_head(gnn_out, fcn_out, sch_out, params)
    out = jax.block_until_ready(out)
    assert out.shape == (BATCH, NUM_CLASSES)

    # tight check against a reference with identical folded bf16/f32 math
    ref_bf16 = reference_head_bf16(gnn_out, fcn_out, sch_out, params)
    assert jnp.allclose(out, ref_bf16, atol=1e-3, rtol=1e-3)

    # loose check against the full-f32 PyTorch-equivalent head
    ref_f32 = reference_head_f32(gnn_out, fcn_out, sch_out, params)
    assert jnp.allclose(out, ref_f32, atol=6e-2, rtol=6e-2)

    print("KERNEL_OK")
</pallas_src>

<mosaic_0001>
module attributes {stable_mosaic.version = 11 : i64} {
  func.func @sphere_head_kernel(%arg0: i32, %arg1: memref<8x192xbf16, #tpu.memory_space<vmem>>, %arg2: memref<192x64xbf16, #tpu.memory_space<vmem>>, %arg3: memref<1x64xf32, #tpu.memory_space<vmem>>, %arg4: memref<64x128xbf16, #tpu.memory_space<vmem>>, %arg5: memref<1x128xf32, #tpu.memory_space<vmem>>, %arg6: memref<8x128xf32, #tpu.memory_space<vmem>>) attributes {dimension_semantics = [#tpu.dimension_semantics<parallel>], iteration_bounds = array<i64: 1>, scalar_prefetch = 0 : i64, scratch_operands = 0 : i64, tpu.core_type = #tpu.core_type<tc>, window_params = [{transform_indices = @transform_0, window_bounds = array<i64: 8, 192>}, {pipeline_mode = #tpu.pipeline_mode<synchronous>, transform_indices = @transform_1, window_bounds = array<i64: 192, 64>}, {pipeline_mode = #tpu.pipeline_mode<synchronous>, transform_indices = @transform_2, window_bounds = array<i64: 1, 64>}, {pipeline_mode = #tpu.pipeline_mode<synchronous>, transform_indices = @transform_3, window_bounds = array<i64: 64, 128>}, {pipeline_mode = #tpu.pipeline_mode<synchronous>, transform_indices = @transform_4, window_bounds = array<i64: 1, 128>}, {transform_indices = @transform_5, window_bounds = array<i64: 8, 128>}]} {
    %c0 = arith.constant 0 : index
    %c0_0 = arith.constant 0 : index
    %0 = vector.load %arg1[%c0, %c0_0] : memref<8x192xbf16, #tpu.memory_space<vmem>>, vector<8x192xbf16>
    %c0_1 = arith.constant 0 : index
    %c0_2 = arith.constant 0 : index
    %1 = vector.load %arg2[%c0_1, %c0_2] : memref<192x64xbf16, #tpu.memory_space<vmem>>, vector<192x64xbf16>
    %cst = arith.constant dense<0.000000e+00> : vector<8x64xf32>
    %2 = tpu.matmul %0, %1, %cst {dimension_numbers = #tpu.dot_dimension_numbers<[1], [0], [0], [1], [0, 0, 1, 1], [], []>} : vector<8x192xbf16>, vector<192x64xbf16>, vector<8x64xf32> -> vector<8x64xf32>
    %c0_3 = arith.constant 0 : index
    %c0_4 = arith.constant 0 : index
    %3 = vector.load %arg3[%c0_3, %c0_4] : memref<1x64xf32, #tpu.memory_space<vmem>>, vector<1x64xf32>
    %4 = vector.broadcast %3 : vector<1x64xf32> to vector<8x64xf32>
    %5 = arith.addf %2, %4 : vector<8x64xf32>
    %cst_5 = arith.constant 0.000000e+00 : f32
    %6 = vector.broadcast %cst_5 : f32 to vector<8x64xf32>
    %7 = arith.maximumf %5, %6 : vector<8x64xf32>
    %8 = arith.truncf %7 : vector<8x64xf32> to vector<8x64xbf16>
    %c0_6 = arith.constant 0 : index
    %c0_7 = arith.constant 0 : index
    %9 = vector.load %arg4[%c0_6, %c0_7] : memref<64x128xbf16, #tpu.memory_space<vmem>>, vector<64x128xbf16>
    %cst_8 = arith.constant dense<0.000000e+00> : vector<8x128xf32>
    %10 = tpu.matmul %8, %9, %cst_8 {dimension_numbers = #tpu.dot_dimension_numbers<[1], [0], [0], [1], [0, 0, 1, 1], [], []>} : vector<8x64xbf16>, vector<64x128xbf16>, vector<8x128xf32> -> vector<8x128xf32>
    %c0_9 = arith.constant 0 : index
    %c0_10 = arith.constant 0 : index
    %11 = vector.load %arg5[%c0_9, %c0_10] : memref<1x128xf32, #tpu.memory_space<vmem>>, vector<1x128xf32>
    %12 = vector.broadcast %11 : vector<1x128xf32> to vector<8x128xf32>
    %13 = arith.addf %10, %12 : vector<8x128xf32>
    %c0_11 = arith.constant 0 : index
    %c0_12 = arith.constant 0 : index
    %14 = vector.load %arg6[%c0_11, %c0_12] : memref<8x128xf32, #tpu.memory_space<vmem>>, vector<8x128xf32>
    tpu.vector_store %arg6[%c0_11, %c0_12], %13 {strides = array<i32>} : memref<8x128xf32, #tpu.memory_space<vmem>>, vector<8x128xf32>,
    return
  }
  func.func @transform_0(%arg0: i32) -> (i32, i32) {
    %c0_i32 = arith.constant 0 : i32
    %c0_i32_0 = arith.constant 0 : i32
    return %arg0, %c0_i32 : i32, i32
  }
  func.func @transform_1(%arg0: i32) -> (i32, i32) {
    %c0_i32 = arith.constant 0 : i32
    %c0_i32_0 = arith.constant 0 : i32
    %c0_i32_1 = arith.constant 0 : i32
    return %c0_i32, %c0_i32_0 : i32, i32
  }
  func.func @transform_2(%arg0: i32) -> (i32, i32) {
    %c0_i32 = arith.constant 0 : i32
    %c0_i32_0 = arith.constant 0 : i32
    %c0_i32_1 = arith.constant 0 : i32
    return %c0_i32, %c0_i32_0 : i32, i32
  }
  func.func @transform_3(%arg0: i32) -> (i32, i32) {
    %c0_i32 = arith.constant 0 : i32
    %c0_i32_0 = arith.constant 0 : i32
    %c0_i32_1 = arith.constant 0 : i32
    return %c0_i32, %c0_i32_0 : i32, i32
  }
  func.func @transform_4(%arg0: i32) -> (i32, i32) {
    %c0_i32 = arith.constant 0 : i32
    %c0_i32_0 = arith.constant 0 : i32
    %c0_i32_1 = arith.constant 0 : i32
    return %c0_i32, %c0_i32_0 : i32, i32
  }
  func.func @transform_5(%arg0: i32) -> (i32, i32) {
    %c0_i32 = arith.constant 0 : i32
    %c0_i32_0 = arith.constant 0 : i32
    return %arg0, %c0_i32 : i32, i32
  }
}

</mosaic_0001>

<bundles_post_ra>
// kernel: tpu_custom_call.1
= control target key start
LH: loop header
LB: loop body
LE: loop exit
PB: predicated region body
PF: predicated region fallthrough
CT: control target
= control target key end

     0   :  { %s434_s0 = inlined_call_operand.vmem [shape: bf16[8,192], index: 0, kind: input, shape index: {}]   ;;  %s435_s1 = inlined_call_operand.vmem [shape: bf16[192,64], index: 1, kind: input, shape index: {}]   ;;  %s436_s2 = inlined_call_operand.vmem [shape: f32[1,64], index: 2, kind: input, shape index: {}]   ;;  %s437_s3 = inlined_call_operand.vmem [shape: bf16[64,128], index: 3, kind: input, shape index: {}]   ;;  %s438_s4 = inlined_call_operand.vmem [shape: f32[1,128], index: 4, kind: input, shape index: {}]   ;;  %s439_s5 = inlined_call_operand.hbm [shape: f32[8,128], index: 5, kind: output, shape index: {}]  }
   0x1   :  { %v303_v0 = vld [vmem:[%s435_s1 + $0x38] sm:$0xff]  ;;  %v302_v2 = vld [vmem:[%s435_s1 + $0x30] sm:$0xff] }
   0x2   :  { %v307_v1 = vld [vmem:[%s435_s1 + $0x58] sm:$0xff]  ;;  %133 = vmatpush.bf16.msra.mxu0 %v303_v0  ;;  %v306_v3 = vld [vmem:[%s435_s1 + $0x50] sm:$0xff] }
   0x3   :  { %150 = vmatpush.bf16.msra.mxu1 %v307_v1 }
   0x4   :  { %10 = vsyncpa [#allocation3], 0  ;;  %v301_v4 = vld [vmem:[%s435_s1 + $0x28] sm:$0xff]  ;;  %v22_v6 = vld [vmem:[%s434_s0] sm:$0xff]  ;;  %vm129_vm0 = vcmask 523264   ;;  %s221_s7 = sshll.u32 %s439_s5, 4  ;;  %s222_s7 = int_to_ptr.hbm [resolvable:$true] %s221_s7 }
   0x5   :  { %v305_v5 = vld [vmem:[%s435_s1 + $0x48] sm:$0xff]  ;;  %v300_v7 = vld [vmem:[%s435_s1 + $0x20] sm:$0xff]  ;;  %v53_v8 = vunpack.c.h.b16 %v22_v6  ;;  %v299_v10 = vld [vmem:[%s435_s1 + $0x18] sm:$0xff]  ;;  %v52_v14 = vunpack.c.l.b16 %v22_v6 }
   0x6   :  { %134 = vmatpush.bf16.msra.mxu0 %v302_v2  ;;  %v304_v9 = vld [vmem:[%s435_s1 + $0x40] sm:$0xff]  ;;  %v298_v12 = vld [vmem:[%s435_s1 + $0x10] sm:$0xff]  ;;  %v297_v13 = vld [vmem:[%s435_s1 + $0x8] sm:$0xff] }
   0x7   :  { %151 = vmatpush.bf16.msra.mxu1 %v306_v3  ;;  %v55_v11 = vpack.c.b16 %v53_v8, %v53_v8  ;;  %v296_v15 = vld [vmem:[%s435_s1] sm:$0xff]  ;;  %v54_v16 = vpack.c.b16 %v52_v14, %v52_v14  ;;  %v311_v17 = vld [vmem:[%s437_s3 + $0x18] sm:$0xff]  ;;  %v310_v18 = vld [vmem:[%s437_s3 + $0x10] sm:$0xff] }
   0x8   :  { %204 = vmatpush.bf16.msra.mxu2 %v311_v17  ;;  %v309_v19 = vld [vmem:[%s437_s3 + $0x8] sm:$0xff]  ;;  %v308_v20 = vld [vmem:[%s437_s3] sm:$0xff]  ;;  %s341_s3 = smov [#allocation2]  }
   0x9   :  { %v313_v23 = vld [vmem:[%s436_s2] ss:$0 sm:$0xff]  ;;  %s219_s29 = sshll.u32 %s341_s3, 4  ;;  %s220_s29 = int_to_ptr.vmem [resolvable:$true] %s219_s29 }
   0xa   :  { %135 = vmatpush.bf16.msra.mxu0 %v301_v4  ;;  %v314_v30 = vld [vmem:[%s438_s4] ss:$0 sm:$0xff] }
   0xb   :  { %152 = vmatpush.bf16.msra.mxu1 %v305_v5 }
   0xc   :  { %205 = vmatpush.bf16.msra.mxu2 %v310_v18 }
   0xe   :  { %136 = vmatpush.bf16.msra.mxu0 %v300_v7 }
   0xf   :  { %153 = vmatpush.bf16.msra.mxu1 %v304_v9 }
  0x10   :  { %206 = vmatpush.bf16.msra.mxu2 %v309_v19 }
  0x12   :  { %137 = vmatpush.bf16.msra.mxu0 %v299_v10  ;;  %278 = vmatmul.msk.bf16.vlgmr.msra.gmra.mxu1 %vm129_vm0, %v55_v11 }
  0x14   :  { %207 = vmatpush.bf16.msra.mxu2 %v308_v20 }
  0x16   :  { %138 = vmatpush.bf16.msra.mxu0 %v298_v12 }
  0x1a   :  { %139 = vmatpush.bf16.msra.mxu0 %v297_v13 }
  0x1e   :  { %140 = vmatpush.bf16.msra.mxu0 %v296_v15 }
  0x21   :  { %141 = vmatmul.bf16.vlgmr.msra.gmra.mxu0 %v54_v16 }
  0x8f   :  { %v155_v21 = vpop.f32.mrf.mxu1 }
  0x97   :  { %v157_v22 = vpop.f32.mrf.mxu1 }
  0x9e   :  { %v142_v24 = vpop.f32.mrf.mxu0 }
  0x9f   :  { %v143_v25 = vadd.f32 %v313_v23, %v142_v24 }
  0xa1   :  { %v156_v26 = vadd.f32 %v155_v21, %v143_v25 }
  0xa3   :  { %v159_v27 = vmax.f32 %v156_v26, 0.0 }
  0xa5   :  { %v160_v28 = vpack.c.bf16 %v159_v27, %v159_v27 }
  0xa6   :  { %v144_v29 = vpop.f32.mrf.mxu0 }
  0xa7   :  { %295 = vmatmul.msk.bf16.vlgmr.msra.gmra.mxu2 %vm129_vm0, %v160_v28 }
 0x12a   :  { %v209_v31 = vpop.f32.mrf.mxu2 }
 0x12b   :  { %v210_v32 = vadd.f32 %v314_v30, %v209_v31 }
 0x12d   :  { %213 = vst [vmem:[#allocation2] sm:$0xff] %v210_v32 }
 0x12e   :  { %224 = dma.vmem_to_hbm [thread:$0]  %s220_s29, 128, %s222_s7, [#allocation3]  }
 0x132   :  { %v211_v33 = vpop.f32.mrf.mxu2 }
 0x133   :  { %339 = dma.done.wait [#allocation3], 128  }
 0x134   :  { %340 = vsyncadd [#allocation3], 4294967168 }
 0x135   :  { %229 = vsyncpa [#allocation3], 1 }

</bundles_post_ra>
